<compile_context>
chip_gen: v7x
topology: tpu7x:2x2x1
jax: 0.10.0
libtpu: 0.0.40
codegen_flags: <defaults>
</compile_context>

<pallas_src>
import functools

import jax
import jax.numpy as jnp
from jax.experimental import pallas as pl
from jax.experimental.pallas import tpu as pltpu

LANE = 128
SUBLANE = 8


def _round_up(v, m):
    return (v + m - 1) // m * m


# ----------------------------- Pallas kernels ------------------------------ #
def _gcn_layer1_kernel(a_ref, x_ref, w1_ref, b1_ref, h_ref):
    # h_blk = relu((A_blk @ X) @ W1 + b1)   (== relu(A_blk @ (X @ W1) + b1))
    ax = jnp.dot(a_ref[...], x_ref[...], preferred_element_type=jnp.float32)
    axw = jnp.dot(ax.astype(jnp.bfloat16), w1_ref[...],
                  preferred_element_type=jnp.float32)
    h = jnp.maximum(axw + b1_ref[...], 0.0)            # bias + ReLU in f32
    # F.dropout(p=0.5, training=False) -> identity in eval mode
    # TODO(synk): training-mode dropout (pltpu.prng_random_bits mask) not wired in.
    h_ref[...] = h.astype(h_ref.dtype)


def _gcn_layer2_kernel(a_ref, h_ref, w2_ref, b2_ref, out_ref, *, num_classes):
    # logits_blk = (A_blk @ H) @ W2 + b2 ; out = log_softmax over valid classes
    ah = jnp.dot(a_ref[...], h_ref[...], preferred_element_type=jnp.float32)
    logits = jnp.dot(ah.astype(jnp.bfloat16), w2_ref[...],
                     preferred_element_type=jnp.float32) + b2_ref[...]
    # mask out lane-padding columns so they don't contribute to the softmax
    col = jax.lax.broadcasted_iota(jnp.int32, logits.shape, 1)
    valid = col < num_classes
    masked = jnp.where(valid, logits, jnp.float32(-1e30))
    m = jnp.max(masked, axis=1, keepdims=True)          # lane-axis reduce (XLU)
    z = masked - m
    p = jnp.where(valid, jnp.exp(z), 0.0)               # EUP
    lse = jnp.log(jnp.sum(p, axis=1, keepdims=True))
    out_ref[...] = (z - lse).astype(out_ref.dtype)


# ------------------------------- wrapper ----------------------------------- #
def gcn_forward(a_hat, x, w1, b1, w2, b2, *, tm=64):
    n, f0 = x.shape
    hid = w1.shape[1]
    c = w2.shape[1]

    f0p = _round_up(f0, LANE)
    hp = _round_up(hid, LANE)
    cp = _round_up(c, LANE)
    n_p = _round_up(n, max(tm, SUBLANE))

    # zero-pad to lane/sublane-friendly shapes (zeros do not change the math)
    a_p = jnp.zeros((n_p, n_p), jnp.bfloat16).at[:n, :n].set(a_hat.astype(jnp.bfloat16))
    x_p = jnp.zeros((n_p, f0p), jnp.bfloat16).at[:n, :f0].set(x.astype(jnp.bfloat16))
    w1_p = jnp.zeros((f0p, hp), jnp.bfloat16).at[:f0, :hid].set(w1.astype(jnp.bfloat16))
    b1_p = jnp.zeros((1, hp), jnp.float32).at[:, :hid].set(b1.astype(jnp.float32))
    w2_p = jnp.zeros((hp, cp), jnp.bfloat16).at[:hid, :c].set(w2.astype(jnp.bfloat16))
    b2_p = jnp.zeros((1, cp), jnp.float32).at[:, :c].set(b2.astype(jnp.float32))

    grid = (n_p // tm,)
    params = pltpu.CompilerParams(dimension_semantics=("parallel",))

    # ---- pass 1: h = relu(A_hat @ X @ W1 + b1), row-tiled over nodes ----
    h_p = pl.pallas_call(
        _gcn_layer1_kernel,
        out_shape=jax.ShapeDtypeStruct((n_p, hp), jnp.bfloat16),
        grid=grid,
        in_specs=[
            pl.BlockSpec((tm, n_p), lambda i: (i, 0)),    # A_hat row block (pipelined)
            pl.BlockSpec((n_p, f0p), lambda i: (0, 0)),   # X (resident)
            pl.BlockSpec((f0p, hp), lambda i: (0, 0)),    # W1 (resident)
            pl.BlockSpec((1, hp), lambda i: (0, 0)),      # b1
        ],
        out_specs=pl.BlockSpec((tm, hp), lambda i: (i, 0)),
        compiler_params=params,
    )(a_p, x_p, w1_p, b1_p)

    # ---- pass 2: out = log_softmax(A_hat @ h @ W2 + b2), row-tiled ----
    out_p = pl.pallas_call(
        functools.partial(_gcn_layer2_kernel, num_classes=c),
        out_shape=jax.ShapeDtypeStruct((n_p, cp), jnp.float32),
        grid=grid,
        in_specs=[
            pl.BlockSpec((tm, n_p), lambda i: (i, 0)),    # A_hat row block
            pl.BlockSpec((n_p, hp), lambda i: (0, 0)),    # h (resident)
            pl.BlockSpec((hp, cp), lambda i: (0, 0)),     # W2
            pl.BlockSpec((1, cp), lambda i: (0, 0)),      # b2
        ],
        out_specs=pl.BlockSpec((tm, cp), lambda i: (i, 0)),
        compiler_params=params,
    )(a_p, h_p, w2_p, b2_p)

    return out_p[:n, :c]


# ------------------------------- JAX glue ----------------------------------- #
def build_norm_adj(edge_index, edge_weight, num_nodes):
    """Dense D^-1/2 (A + I) D^-1/2.  A_hat[i, j] = weight of edge j -> i."""
    src = edge_index[0]
    dst = edge_index[1]
    a = jnp.zeros((num_nodes, num_nodes), jnp.float32)
    a = a.at[dst, src].add(edge_weight.astype(jnp.float32))
    a = a + jnp.eye(num_nodes, dtype=jnp.float32)        # self-loops, weight 1
    deg = a.sum(axis=1)
    d_inv_sqrt = jnp.where(deg > 0, 1.0 / jnp.sqrt(deg), 0.0)
    return d_inv_sqrt[:, None] * a * d_inv_sqrt[None, :]


def glorot(key, shape):
    limit = jnp.sqrt(6.0 / (shape[0] + shape[1]))
    return jax.random.uniform(key, shape, jnp.float32, -limit, limit)


def gcn_reference(a_hat, x, w1, b1, w2, b2):
    h = jnp.maximum(a_hat @ (x @ w1) + b1, 0.0)
    y = a_hat @ (h @ w2) + b2
    return jax.nn.log_softmax(y, axis=1)


# --------------------------------- main ------------------------------------- #
if __name__ == "__main__":
    key = jax.random.PRNGKey(0)
    k_x, k_e, k_w, k_w1, k_w2 = jax.random.split(key, 5)

    # small but vreg-exercising, module-consistent shapes
    num_nodes = 128
    num_node_features = 16
    hidden = 16
    num_classes = 4
    num_edges = 512

    # deterministic synthetic graph
    x = jax.random.normal(k_x, (num_nodes, num_node_features), jnp.float32)
    edge_index = jax.random.randint(k_e, (2, num_edges), 0, num_nodes)
    edge_attr = jax.random.uniform(k_w, (num_edges,), jnp.float32, 0.1, 1.0)

    # deterministic parameters (GCNConv: glorot weights, zero bias)
    w1 = glorot(k_w1, (num_node_features, hidden))
    b1 = jnp.zeros((1, hidden), jnp.float32)
    w2 = glorot(k_w2, (hidden, num_classes))
    b2 = jnp.zeros((1, num_classes), jnp.float32)

    a_hat = build_norm_adj(edge_index, edge_attr, num_nodes)

    out = gcn_forward(a_hat, x, w1, b1, w2, b2, tm=64)
    jax.block_until_ready(out)

    assert out.shape == (num_nodes, num_classes)
    # rows of log_softmax must exponentiate-sum to 1
    assert bool(jnp.allclose(jnp.exp(out).sum(axis=1), 1.0, atol=1e-4))
    # f32 reference check (bf16 MXU operands -> loose tolerance)
    ref = gcn_reference(a_hat, x, w1, b1, w2, b2)
    assert bool(jnp.allclose(out, ref, atol=7.5e-2, rtol=1e-2))
    print("KERNEL_OK")
</pallas_src>

<mosaic_0001>
module attributes {stable_mosaic.version = 11 : i64} {
  func.func @_gcn_layer1_kernel(%arg0: i32, %arg1: memref<64x128xbf16, #tpu.memory_space<vmem>>, %arg2: memref<128x128xbf16, #tpu.memory_space<vmem>>, %arg3: memref<128x128xbf16, #tpu.memory_space<vmem>>, %arg4: memref<1x128xf32, #tpu.memory_space<vmem>>, %arg5: memref<64x128xbf16, #tpu.memory_space<vmem>>) attributes {dimension_semantics = [#tpu.dimension_semantics<parallel>], iteration_bounds = array<i64: 2>, scalar_prefetch = 0 : i64, scratch_operands = 0 : i64, tpu.core_type = #tpu.core_type<tc>, window_params = [{transform_indices = @transform_0, window_bounds = array<i64: 64, 128>}, {pipeline_mode = #tpu.pipeline_mode<synchronous>, transform_indices = @transform_1, window_bounds = array<i64: 128, 128>}, {pipeline_mode = #tpu.pipeline_mode<synchronous>, transform_indices = @transform_2, window_bounds = array<i64: 128, 128>}, {pipeline_mode = #tpu.pipeline_mode<synchronous>, transform_indices = @transform_3, window_bounds = array<i64: 1, 128>}, {transform_indices = @transform_4, window_bounds = array<i64: 64, 128>}]} {
    %c0 = arith.constant 0 : index
    %c0_0 = arith.constant 0 : index
    %0 = vector.load %arg1[%c0, %c0_0] : memref<64x128xbf16, #tpu.memory_space<vmem>>, vector<64x128xbf16>
    %c0_1 = arith.constant 0 : index
    %c0_2 = arith.constant 0 : index
    %1 = vector.load %arg2[%c0_1, %c0_2] : memref<128x128xbf16, #tpu.memory_space<vmem>>, vector<128x128xbf16>
    %cst = arith.constant dense<0.000000e+00> : vector<64x128xf32>
    %2 = tpu.matmul %0, %1, %cst {dimension_numbers = #tpu.dot_dimension_numbers<[1], [0], [0], [1], [0, 0, 1, 1], [], []>} : vector<64x128xbf16>, vector<128x128xbf16>, vector<64x128xf32> -> vector<64x128xf32>
    %3 = arith.truncf %2 : vector<64x128xf32> to vector<64x128xbf16>
    %c0_3 = arith.constant 0 : index
    %c0_4 = arith.constant 0 : index
    %4 = vector.load %arg3[%c0_3, %c0_4] : memref<128x128xbf16, #tpu.memory_space<vmem>>, vector<128x128xbf16>
    %cst_5 = arith.constant dense<0.000000e+00> : vector<64x128xf32>
    %5 = tpu.matmul %3, %4, %cst_5 {dimension_numbers = #tpu.dot_dimension_numbers<[1], [0], [0], [1], [0, 0, 1, 1], [], []>} : vector<64x128xbf16>, vector<128x128xbf16>, vector<64x128xf32> -> vector<64x128xf32>
    %c0_6 = arith.constant 0 : index
    %c0_7 = arith.constant 0 : index
    %6 = vector.load %arg4[%c0_6, %c0_7] : memref<1x128xf32, #tpu.memory_space<vmem>>, vector<1x128xf32>
    %7 = vector.broadcast %6 : vector<1x128xf32> to vector<64x128xf32>
    %8 = arith.addf %5, %7 : vector<64x128xf32>
    %cst_8 = arith.constant 0.000000e+00 : f32
    %9 = vector.broadcast %cst_8 : f32 to vector<64x128xf32>
    %10 = arith.maximumf %8, %9 : vector<64x128xf32>
    %11 = arith.truncf %10 : vector<64x128xf32> to vector<64x128xbf16>
    %c0_9 = arith.constant 0 : index
    %c0_10 = arith.constant 0 : index
    %12 = vector.load %arg5[%c0_9, %c0_10] : memref<64x128xbf16, #tpu.memory_space<vmem>>, vector<64x128xbf16>
    tpu.vector_store %arg5[%c0_9, %c0_10], %11 {strides = array<i32>} : memref<64x128xbf16, #tpu.memory_space<vmem>>, vector<64x128xbf16>,
    return
  }
  func.func @transform_0(%arg0: i32) -> (i32, i32) {
    %c0_i32 = arith.constant 0 : i32
    %c0_i32_0 = arith.constant 0 : i32
    return %arg0, %c0_i32 : i32, i32
  }
  func.func @transform_1(%arg0: i32) -> (i32, i32) {
    %c0_i32 = arith.constant 0 : i32
    %c0_i32_0 = arith.constant 0 : i32
    %c0_i32_1 = arith.constant 0 : i32
    return %c0_i32, %c0_i32_0 : i32, i32
  }
  func.func @transform_2(%arg0: i32) -> (i32, i32) {
    %c0_i32 = arith.constant 0 : i32
    %c0_i32_0 = arith.constant 0 : i32
    %c0_i32_1 = arith.constant 0 : i32
    return %c0_i32, %c0_i32_0 : i32, i32
  }
  func.func @transform_3(%arg0: i32) -> (i32, i32) {
    %c0_i32 = arith.constant 0 : i32
    %c0_i32_0 = arith.constant 0 : i32
    %c0_i32_1 = arith.constant 0 : i32
    return %c0_i32, %c0_i32_0 : i32, i32
  }
  func.func @transform_4(%arg0: i32) -> (i32, i32) {
    %c0_i32 = arith.constant 0 : i32
    %c0_i32_0 = arith.constant 0 : i32
    return %arg0, %c0_i32 : i32, i32
  }
}

</mosaic_0001>

<bundles_post_ra>
// kernel: tpu_custom_call.1
= control target key start
LH: loop header
LB: loop body
LE: loop exit
PB: predicated region body
PF: predicated region fallthrough
CT: control target
= control target key end

     0   :  { %9 = vsyncpa [#allocation3], 0  ;;  %s1393_s0 = inlined_call_operand.hbm [shape: bf16[128,128], index: 0, kind: input, shape index: {}]   ;;  %s1394_s1 = inlined_call_operand.hbm [shape: bf16[128,128], index: 1, kind: input, shape index: {}]   ;;  %s1395_s2 = inlined_call_operand.hbm [shape: bf16[128,128], index: 2, kind: input, shape index: {}]   ;;  %s1396_s3 = inlined_call_operand.vmem [shape: f32[1,128], index: 3, kind: input, shape index: {}]   ;;  %s1397_s4 = inlined_call_operand.hbm [shape: bf16[128,128], index: 4, kind: output, shape index: {}]  }
   0x1   :  { %11 = vsyncpa [#allocation3 + $0x1], 0 }
   0x2   :  { %12 = vsyncpa [#allocation6], 0 }
   0x3   :  { %13 = vsyncpa [#allocation4], 0 }
   0x4   :  { %15 = vsyncpa [#allocation4 + $0x1], 0  ;;  %s1137_s15 = smov 0   ;;  %s1139_s16 = smov 0  }
   0x5   :  { %s1141_s17 = smov 0   ;;  %s1143_s18 = smov 0  }
   0x6 LB: > { %s1158_s19 = sadd.s32 4294967295, %s1102_s18   ;;  %s703_s20 = sadd.s32 4294967294, %s1102_s18   ;;  %s1102_s18 = sphi %s1143_s18, %s1417_s18   ;;  %s1098_s17 = sphi %s1141_s17, %s1416_s17   ;;  %s1094_s16 = sphi %s1139_s16, %s1415_s16   ;;  %s1090_s15 = sphi %s1137_s15, %s1414_s15  }
   0x7   : > { %p41_p0 = scmp.ne.s32.totalorder %s1094_s16, %s1090_s15  ;;  %p1398_p1 = scmp.eq.s32.totalorder %s1158_s19, 0 }
   0x8   : > { %p134_p3 = scmp.eq.s32.totalorder %s703_s20, 1  ;;  %p704_p5 = scmp.ge.s32.totalorder %s1102_s18, 1 }
   0x9   : > { %p1167_p4 = por %p1398_p1, %p41_p0  ;;  %p141_p7 = scmp.lt.s32.totalorder %s1102_s18, 3 }
   0xa   : > { %p1172_p6 = por %p134_p3, %p41_p0  ;;  %s1104_s24 = smov [#allocation5]  }
   0xb   : > { %s1401_s21 = scalar_select %p1167_p4, 1, 0 }
   0xc   : > { %s1402_s22 = scalar_select %p1172_p6, 1, 0 }
   0xd   : > { %p1177_p8 = pnand %p704_p5, %p141_p7  ;;  %s153_s25 = sshll.u32 %s1104_s24, 4  ;;  %s1181_s25 = int_to_ptr.vmem [resolvable:$true] %s153_s25 }
   0xe   : > { %s1105_s27 = smov [#allocation7]   ;;  %s946_s5 = scalar_lea.hbm %s1394_s1, 1024 }
   0xf   : > { %p867_p9 = pneg %p1177_p8  ;;  %s166_s28 = sshll.u32 %s1105_s27, 4  ;;  %s1192_s28 = int_to_ptr.vmem [resolvable:$true] %s166_s28 }
  0x10   : > { %p947_p12 = scmp.ne.s32.totalorder %s1394_s1, %s946_s5  ;;  %p953_p5 = scmp.lt.u32.totalorder %s946_s5, %s1394_s1 }
  0x11   : > { %p1188_p11 = pnand %p867_p9, %p1398_p1 }
  0x13   : > { %p948_p13 = pneg %p1188_p11 }
  0x15   : > { %p949_p0 = pnand %p948_p13, %p947_p12 }
  0x17   : > { %p950_p3 = pneg %p949_p0 }
  0x19   : > { %p955_p7 = pnand %p953_p5, %p950_p3 }
  0x1b   : > { %958 = shalt.err (!%p955_p7)
}
  0x1c   : > { %s959_s10 = scalar_lea.vmem %s1181_s25, 1024  ;;  %p967_p2 = scmp.lt.s32.totalorder %s1181_s25, %s1181_s25 }
  0x1d   : > { %p960_p9 = scmp.ne.s32.totalorder %s1181_s25, %s959_s10  ;;  %p968_p12 = scmp.lt.s32.totalorder %s959_s10, %s959_s10 }
  0x1f   : > { %p962_p10 = pnand %p960_p9, %p948_p13  ;;  %p969_p0 = por %p968_p12, %p967_p2 }
  0x21   : > { %p963_p1 = pneg %p962_p10 }
  0x23   : > { %p970_p6 = pnand %p969_p0, %p963_p1 }
  0x25   : > { %973 = shalt.err (!%p970_p6)
}
  0x26   : > { %s1106_s11 = smov 64   ;;  %s1107_s12 = smov 4  }
  0x27   : > { %870 = dma.hbm_to_vmem [thread:$0]  (!%p1188_p11), %s1394_s1, 1024, %s1181_s25, [#allocation6], %s1106_s11, %s1106_s11, %s1107_s12  }
  0x28   : > { %s974_s27 = scalar_lea.hbm %s1395_s2, 1024 }
  0x29   : > { %p975_p1 = scmp.ne.s32.totalorder %s1395_s2, %s974_s27  ;;  %p981_p10 = scmp.lt.u32.totalorder %s974_s27, %s1395_s2 }
  0x2b   : > { %p977_p2 = pnand %p975_p1, %p948_p13 }
  0x2d   : > { %p978_p6 = pneg %p977_p2 }
  0x2f   : > { %p983_p3 = pnand %p981_p10, %p978_p6 }
  0x31   : > { %986 = shalt.err (!%p983_p3)
}
  0x32   : > { %s987_s25 = scalar_lea.vmem %s1192_s28, 1024  ;;  %p995_p12 = scmp.lt.s32.totalorder %s1192_s28, %s1192_s28 }
  0x33   : > { %p988_p5 = scmp.ne.s32.totalorder %s1192_s28, %s987_s25  ;;  %p996_p0 = scmp.lt.s32.totalorder %s987_s25, %s987_s25 }
  0x35   : > { %p990_p7 = pnand %p988_p5, %p948_p13  ;;  %p997_p1 = por %p996_p0, %p995_p12 }
  0x37   : > { %p991_p9 = pneg %p990_p7 }
  0x39   : > { %p998_p2 = pnand %p997_p1, %p991_p9 }
  0x3b   : > { %1001 = shalt.err (!%p998_p2)
}
  0x3c   : > { %873 = dma.hbm_to_vmem [thread:$0]  (!%p1188_p11), %s1395_s2, 1024, %s1192_s28, [#allocation6], %s1106_s11, %s1106_s11, %s1107_s12  }
  0x3d   : > { %s1253_s26 = sadd.s32 1, %s1102_s18   ;;  %s28_s9 = sadd.s32 1, %s1098_s17 }
  0x3e   : > { %s25_s10 = ssub.s32 %s1102_s18, %s1253_s26  ;;  %p35_p13 = scmp.ne.s32.totalorder %s1098_s17, %s1094_s16 }
  0x3f   : > { %p26_p6 = scmp.eq.s32.totalorder %s25_s10, 0  ;;  %p36_p10 = scmp.eq.s32.totalorder %s1102_s18, 0 }
  0x40   : > { %p1405_p3 = scmp.eq.s32.totalorder %s1158_s19, 1  ;;  %p884_p7 = scmp.lt.s32.totalorder %s1102_s18, 2 }
  0x41   : > { %s1269_s14 = scalar_select %p26_p6, %s1098_s17, %s28_s9  }
  0x42   : > { %p1263_p5 = por %p1405_p3, %p35_p13  ;;  %p37_p9 = por %p36_p10, %p35_p13 }
  0x43   : > { %s183_s20 = sand.u32 1, %s1098_s17   ;;  %s750_s28 = sshll.u32 %s1102_s18, 9 }
  0x44   : > { %s1406_s13 = scalar_select %p1263_p5, 1, 0 }
  0x45   : > { %s708_s24 = sshll.u32 %s183_s20, 5  ;;  %s1276_s30 = scalar_lea.hbm %s1393_s0, %s750_s28 }
  0x46   : > { %s187_s5 = scalar_lea.vmem [#allocation2], %s708_s24  ;;  %p1280_p11 = pnand %p884_p7, %p37_p9 }
  0x47   : > { %s194_s6 = sshll.u32 %s187_s5, 4  ;;  %s1284_s7 = scalar_lea.sflag [#allocation3], %s183_s20  ;;  %s1278_s6 = int_to_ptr.vmem [resolvable:$true] %s194_s6 }
  0x48   : > { %s1002_s8 = scalar_lea.hbm %s1276_s30, 512  ;;  %p1004_p0 = pneg %p1280_p11 }
  0x49   : > { %p1003_p12 = scmp.ne.s32.totalorder %s1276_s30, %s1002_s8  ;;  %s1007_s24 = scalar_lea.hbm %s1393_s0, 1024 }
  0x4a   : > { %p1008_p13 = scmp.lt.u32.totalorder %s1276_s30, %s1393_s0  ;;  %p1009_p6 = scmp.lt.u32.totalorder %s1007_s24, %s1002_s8 }
  0x4b   : > { %p1005_p1 = pnand %p1004_p0, %p1003_p12  ;;  %p1011_p3 = scmp.lt.u32.totalorder %s1002_s8, %s1276_s30 }
  0x4c   : > { %p1010_p10 = por %p1009_p6, %p1008_p13 }
  0x4d   : > { %p1006_p2 = pneg %p1005_p1 }
  0x4e   : > { %p1012_p7 = por %p1011_p3, %p1010_p10 }
  0x50   : > { %p1013_p9 = pnand %p1012_p7, %p1006_p2 }
  0x52   : > { %1016 = shalt.err (!%p1013_p9)
}
  0x53   : > { %s1017_s20 = scalar_lea.vmem %s1278_s6, 512  ;;  %s1108_s29 = smov [#allocation2]  }
  0x54   : > { %p1018_p12 = scmp.ne.s32.totalorder %s1278_s6, %s1017_s20  ;;  %s1022_s5 = sshll.u32 %s1108_s29, 4  ;;  %s1023_s5 = int_to_ptr.vmem [resolvable:$false] %s1022_s5 }
  0x55   : > { %s1024_s9 = scalar_lea.vmem %s1023_s5, 1024  ;;  %p1025_p4 = scmp.lt.s32.totalorder %s1278_s6, %s1023_s5 }
  0x56   : > { %p1020_p1 = pnand %p1018_p12, %p1004_p0  ;;  %p1026_p13 = scmp.lt.s32.totalorder %s1024_s9, %s1017_s20 }
  0x58   : > { %p1021_p5 = pneg %p1020_p1  ;;  %p1027_p6 = por %p1026_p13, %p1025_p4 }
  0x5a   : > { %p1028_p10 = pnand %p1027_p6, %p1021_p5 }
  0x5c   : > { %1031 = shalt.err (!%p1028_p10)
}
  0x5d   : > { %877 = dma.hbm_to_vmem [thread:$0]  (!%p1280_p11), %s1276_s30, 512, %s1278_s6, %s1284_s7, %s1106_s11, %s1106_s11, %s1107_s12  }
  0x5e   : > { %206 = sbr.rel (%p1177_p8) target bundleno = 600 (0x258), region = 36  ;;  %s1318_s8 = sand.u32 (!%p1177_p8), 1, %s1094_s16  }
  0x5f   : > { %s712_s10 = sshll.u32 (!%p1177_p8), %s1318_s8, 5  ;;  %s209_s24 = scalar_lea.sflag (!%p1177_p8), [#allocation3], %s1318_s8 }
  0x60   : > { %s1324_s25 = scalar_lea.vmem (!%p1177_p8), [#allocation2], %s712_s10  ;;  %p1408_p4 = scmp.ne.s32.totalorder (!%p1177_p8), %s1401_s21, 0 }
  0x65   : > { %1077 = dma.done.wait (%p1408_p4), %s209_s24, 512  }
  0x66   : > { %1079 = vsyncadd (%p1408_p4), %s209_s24, 4294966784  ;;  %p1409_p5 = scmp.eq.s32.totalorder %s1158_s19, 0 }
  0x68   : > { %1081 = dma.done.wait (%p1409_p5), [#allocation6], 2048   ;;  %p1410_p8 = pmov %p1409_p5 }
  0x69   : > { %v926_v0 = vld [vmem:[#allocation5] sm:$0xff]   ;;  %v927_v1 = vld [vmem:[#allocation5 + $0x8] sm:$0xff]   ;;  %v928_v2 = vld [vmem:[#allocation5 + $0x10] sm:$0xff]   ;;  %s244_s11 = scalar_lea.vmem [#allocation8], %s712_s10  ;;  %s759_s30 = sshll.u32 %s1158_s19, 9 }
  0x6a   : > { %1083 = vsyncadd (%p1410_p8), [#allocation6], 4294965248  ;;  %807 = vmatprep.subr.bf16.mxu0 %v926_v0  ;;  %v929_v3 = vld [vmem:[#allocation5 + $0x18] sm:$0xff]   ;;  %v934_v4 = vld [vmem:[%s1324_s25] sm:$0xff]   ;;  %s611_s12 = sshll.u32 %s244_s11, 4  ;;  %s1349_s28 = scalar_lea.hbm %s1397_s4, %s759_s30  ;;  %s1344_s12 = int_to_ptr.vmem [resolvable:$true] %s611_s12 }
  0x6b   : > { %808 = vmatpush3.bf16.msra.mxu0 %v926_v0  ;;  %823 = vmatprep.mubr.bf16.mxu0 %v934_v4  ;;  %v930_v5 = vld [vmem:[#allocation5 + $0x20] sm:$0xff]   ;;  %v939_v7 = vld [vmem:[#allocation7 + $0x8] sm:$0xff]   ;;  %v940_v9 = vld [vmem:[#allocation7 + $0x10] sm:$0xff]   ;;  %s598_s27 = scalar_lea.sflag [#allocation4], %s1318_s8  ;;  %s1032_s19 = scalar_lea.vmem %s1344_s12, 512 }
  0x6c   : > { %809 = vmatprep.subr.bf16.mxu0 %v927_v1  ;;  %v938_v6 = vld [vmem:[#allocation7] sm:$0xff]   ;;  %v931_v8 = vld [vmem:[#allocation5 + $0x28] sm:$0xff]   ;;  %v932_v10 = vld [vmem:[#allocation5 + $0x30] sm:$0xff]   ;;  %p1033_p11 = scmp.ne.s32.totalorder %s1344_s12, %s1032_s19  ;;  %p1411_p0 = scmp.ne.s32.totalorder %s1406_s13, 0 }
  0x6d   : > { %831 = vmatprep.subr.bf16.mxu1 %v938_v6  ;;  %v941_v11 = vld [vmem:[#allocation7 + $0x18] sm:$0xff]   ;;  %v942_v13 = vld [vmem:[#allocation7 + $0x20] sm:$0xff]   ;;  %v943_v14 = vld [vmem:[#allocation7 + $0x28] sm:$0xff]   ;;  %s1109_s20 = smov [#allocation8]  }
  0x6e   : > { %832 = vmatpush3.bf16.msra.mxu1 %v938_v6  ;;  %v933_v12 = vld [vmem:[#allocation5 + $0x38] sm:$0xff]   ;;  %v935_v15 = vld [vmem:[%s1324_s25 + $0x8] sm:$0xff]   ;;  %v936_v16 = vld [vmem:[%s1324_s25 + $0x10] sm:$0xff]   ;;  %p1034_p2 = pnand %p1033_p11, %p1411_p0  ;;  %s1036_s29 = sshll.u32 %s1109_s20, 4  ;;  %s1037_s29 = int_to_ptr.vmem [resolvable:$false] %s1036_s29 }
  0x6f   : > { %810 = vmatpush3.bf16.msra.mxu0 %v927_v1  ;;  %833 = vmatprep.subr.bf16.mxu1 %v939_v7  ;;  %v944_v17 = vld [vmem:[#allocation7 + $0x30] sm:$0xff]   ;;  %v937_v18 = vld [vmem:[%s1324_s25 + $0x18] sm:$0xff]   ;;  %v728_v32 = vld [vmem:[%s1396_s3] ss:$0 sm:$0xff]  ;;  %s1038_s5 = scalar_lea.vmem %s1037_s29, 1024  ;;  %p1039_p7 = scmp.lt.s32.totalorder %s1344_s12, %s1037_s29 }
  0x70   : > { %811 = vmatprep.subr.bf16.mxu0 %v928_v2  ;;  %v945_v19 = vld [vmem:[#allocation7 + $0x38] sm:$0xff]   ;;  %p1035_p3 = pneg %p1034_p2  ;;  %p1040_p9 = scmp.lt.s32.totalorder %s1038_s5, %s1032_s19 }
  0x72   : > { %834 = vmatpush3.bf16.msra.mxu1 %v939_v7  ;;  %p1041_p12 = por %p1040_p9, %p1039_p7 }
  0x73   : > { %812 = vmatpush3.bf16.msra.mxu0 %v928_v2  ;;  %835 = vmatprep.subr.bf16.mxu1 %v940_v9 }
  0x74   : > { %813 = vmatprep.subr.bf16.mxu0 %v929_v3  ;;  %p1042_p1 = pnand %p1041_p12, %p1035_p3 }
  0x76   : > { %836 = vmatpush3.bf16.msra.mxu1 %v940_v9 }
  0x77   : > { %814 = vmatpush3.bf16.msra.mxu0 %v929_v3  ;;  %837 = vmatprep.subr.bf16.mxu1 %v941_v11 }
  0x78   : > { %815 = vmatprep.subr.bf16.mxu0 %v930_v5 }
  0x7a   : > { %838 = vmatpush3.bf16.msra.mxu1 %v941_v11 }
  0x7b   : > { %816 = vmatpush3.bf16.msra.mxu0 %v930_v5  ;;  %839 = vmatprep.subr.bf16.mxu1 %v942_v13 }
  0x7c   : > { %817 = vmatprep.subr.bf16.mxu0 %v931_v8 }
  0x7e   : > { %840 = vmatpush3.bf16.msra.mxu1 %v942_v13 }
  0x7f   : > { %818 = vmatpush3.bf16.msra.mxu0 %v931_v8  ;;  %841 = vmatprep.subr.bf16.mxu1 %v943_v14 }
  0x80   : > { %819 = vmatprep.subr.bf16.mxu0 %v932_v10 }
  0x82   : > { %842 = vmatpush3.bf16.msra.mxu1 %v943_v14 }
  0x83   : > { %820 = vmatpush3.bf16.msra.mxu0 %v932_v10  ;;  %843 = vmatprep.subr.bf16.mxu1 %v944_v17 }
  0x84   : > { %821 = vmatprep.subr.bf16.mxu0 %v933_v12 }
  0x86   : > { %844 = vmatpush3.bf16.msra.mxu1 %v944_v17 }
  0x87   : > { %822 = vmatpush3.bf16.msra.mxu0 %v933_v12  ;;  %845 = vmatprep.subr.bf16.mxu1 %v945_v19 }
  0x8a   : > { %824 = vmatmul.mubr.bf16.vlgmr.msra.gmra.mrb[0].mxu0 %v935_v15  ;;  %846 = vmatpush3.bf16.msra.mxu1 %v945_v19 }
  0x8b   : > { %827 = vmatprep.mubr.bf16.mxu0 %v936_v16 }
  0x92   : > { %828 = vmatmul.mubr.bf16.gmra.mrb[4].mxu0 %v937_v18 }
 0x15d   : > { %v825_v20 = vpop.f32.mrb[0].mxu0 }
 0x15e   : > { %v378_v21 = vpop.f32.mrb[1].mxu0 }
 0x15f   : > { %v826_v22 = vpop.f32.mrb[2].mxu0 }
 0x160   : > { %v410_v23 = vpack.c.bf16 %v826_v22, %v825_v20  ;;  %v381_v24 = vpop.f32.mrb[3].mxu0 }
 0x161   : > { %v409_v25 = vpack.c.bf16 %v381_v24, %v378_v21 }
 0x163   : > { %847 = vmatprep.mubr.bf16.mxu1 %v409_v25 }
 0x164   : > { %848 = vmatmul.mubr.bf16.vlgmr.msra.gmra.mrb[0].mxu1 %v410_v23 }
 0x165   : > { %v829_v26 = vpop.f32.mrb[4].mxu0 }
 0x166   : > { %v394_v27 = vpop.f32.mrb[5].mxu0 }
 0x167   : > { %v830_v28 = vpop.f32.mrb[6].mxu0 }
 0x168   : > { %v412_v29 = vpack.c.bf16 %v830_v28, %v829_v26  ;;  %v397_v30 = vpop.f32.mrb[7].mxu0 }
 0x169   : > { %v411_v31 = vpack.c.bf16 %v397_v30, %v394_v27 }
 0x16b   : > { %851 = vmatprep.mubr.bf16.mxu1 %v411_v31 }
 0x16c   : > { %852 = vmatmul.mubr.bf16.gmra.mrb[4].mxu1 %v412_v29 }
 0x237   : > { %v849_v33 = vpop.f32.mrb[0].mxu1 }
 0x238   : > { %v527_v34 = vadd.f32 %v849_v33, %v728_v32  ;;  %v518_v35 = vpop.f32.mrb[1].mxu1 }
 0x239   : > { %v519_v36 = vadd.f32 %v728_v32, %v518_v35  ;;  %v850_v37 = vpop.f32.mrb[2].mxu1 }
 0x23a   : > { %v530_v38 = vadd.f32 %v850_v37, %v728_v32  ;;  %v521_v39 = vpop.f32.mrb[3].mxu1  ;;  %v551_v41 = vmax.f32 %v527_v34, 0.0 }
 0x23b   : > { %v522_v40 = vadd.f32 %v728_v32, %v521_v39  ;;  %v549_v43 = vmax.f32 %v519_v36, 0.0 }
 0x23c   : > { %v552_v42 = vmax.f32 %v530_v38, 0.0 }
 0x23d   : > { %v550_v44 = vmax.f32 %v522_v40, 0.0 }
 0x23e   : > { %v768_v45 = vpack.c.bf16 %v552_v42, %v551_v41 }
 0x23f   : > { %v763_v46 = vpack.c.bf16 %v550_v44, %v549_v43  ;;  %v853_v47 = vpop.f32.mrb[4].mxu1 }
 0x240   : > { %780 = vst [vmem:[%s244_s11 + $0x8] sm:$0xff] %v768_v45   ;;  %v543_v48 = vadd.f32 %v853_v47, %v728_v32  ;;  %v534_v49 = vpop.f32.mrb[5].mxu1 }
 0x241   : > { %764 = vst [vmem:[%s244_s11] sm:$0xff] %v763_v46   ;;  %v535_v50 = vadd.f32 %v728_v32, %v534_v49  ;;  %v854_v51 = vpop.f32.mrb[6].mxu1 }
 0x242   : > { %v546_v52 = vadd.f32 %v854_v51, %v728_v32  ;;  %v537_v53 = vpop.f32.mrb[7].mxu1  ;;  %v555_v55 = vmax.f32 %v543_v48, 0.0 }
 0x243   : > { %v538_v54 = vadd.f32 %v728_v32, %v537_v53  ;;  %v553_v57 = vmax.f32 %v535_v50, 0.0 }
 0x244   : > { %v556_v56 = vmax.f32 %v546_v52, 0.0 }
 0x245   : > { %v554_v58 = vmax.f32 %v538_v54, 0.0 }
 0x246   : > { %v778_v59 = vpack.c.bf16 %v556_v56, %v555_v55 }
 0x247   : > { %v773_v60 = vpack.c.bf16 %v554_v58, %v553_v57 }
 0x248   : > { %782 = vst [vmem:[%s244_s11 + $0x18] sm:$0xff] %v778_v59  }
 0x249   : > { %781 = vst [vmem:[%s244_s11 + $0x10] sm:$0xff] %v773_v60  }
 0x24a   : > { %1045 = shalt.err (!%p1042_p1)
}
 0x24b   : > { %s1046_s9 = scalar_lea.hbm %s1349_s28, 512  ;;  %s1050_s25 = scalar_lea.hbm %s1397_s4, 1024 }
 0x24c   : > { %p1047_p13 = scmp.ne.s32.totalorder %s1349_s28, %s1046_s9  ;;  %p1051_p4 = scmp.lt.u32.totalorder %s1349_s28, %s1397_s4 }
 0x24d   : > { %p1052_p5 = scmp.lt.u32.totalorder %s1050_s25, %s1046_s9  ;;  %p1054_p11 = scmp.lt.u32.totalorder %s1046_s9, %s1349_s28 }
 0x24e   : > { %p1048_p6 = pnand %p1047_p13, %p1411_p0 }
 0x24f   : > { %p1053_p8 = por %p1052_p5, %p1051_p4 }
 0x250   : > { %p1049_p10 = pneg %p1048_p6 }
 0x251   : > { %p1055_p2 = por %p1054_p11, %p1053_p8 }
 0x253   : > { %p1056_p3 = pnand %p1055_p2, %p1049_p10 }
 0x255   : > { %1059 = shalt.err (!%p1056_p3)
}
 0x256   : > { %s1110_s11 = smov 64   ;;  %s1111_s30 = smov 4  }
 0x257   : > { %865 = dma.vmem_to_hbm [thread:$0]  (%p1411_p0), %s1344_s12, 512, %s1349_s28, %s598_s27, %s1110_s11, %s1110_s11, %s1111_s30  }
 0x258 PF: > { %s626_s6 = sand.u32 1, %s1090_s15   ;;  %p1412_p7 = scmp.ne.s32.totalorder %s1402_s22, 0 }
 0x259   : > { %p1413_p9 = scmp.ge.s32.totalorder %s1102_s18, 2  ;;  %s627_s7 = scalar_lea.sflag [#allocation4], %s626_s6 }
 0x25b   : > { %p879_p12 = pnand %p1413_p9, %p1412_p7 }
 0x25d   : > { %1085 = dma.done.wait (!%p879_p12), %s627_s7, 512  }
 0x25e   : > { %1087 = vsyncadd (!%p879_p12), %s627_s7, 4294966784  ;;  %p18_p1 = scmp.ge.s32.totalorder %s1253_s26, 4   ;;  %s1414_s15 = smov %s1094_s16 }
 0x25f   : > { %s1415_s16 = smov %s1098_s17  ;;  %s1416_s17 = smov %s1269_s14 }
 0x260   : > { %s1417_s18 = smov %s1253_s26  ;;  %20 = sbr.rel (!%p18_p1) target bundleno = 6 (0x6), region = 89 }
 0x267   :  { %632 = vsyncpa [#allocation3], 1 }
 0x268   :  { %634 = vsyncpa [#allocation3 + $0x1], 1 }
 0x269   :  { %635 = vsyncpa [#allocation6], 1 }
 0x26a   :  { %636 = vsyncpa [#allocation4], 1 }
 0x26b   :  { %638 = vsyncpa [#allocation4 + $0x1], 1 }

</bundles_post_ra>
